<compile_context>
chip_gen: v7x
topology: tpu7x:2x2x1
jax: 0.10.0
libtpu: 0.0.40
codegen_flags: <defaults>
</compile_context>

<pallas_src>
import jax
import jax.numpy as jnp
from jax import lax
from jax.experimental import pallas as pl
from jax.experimental.pallas import tpu as pltpu

NEG_SLOPE = 0.01            # nn.LeakyReLU default
BN_EPS = 1e-5               # nn.BatchNorm1d default
VMEM_LIMIT_BYTES = 32 * 1024 * 1024   # safe on v5e/v6e (128 MiB) and v7x (64 MiB)

# Matmul operand dtype.  Set to jnp.bfloat16 on v6e/v7x for full-rate MXU and
# halved operand VMEM (accumulation stays f32 via preferred_element_type).
# Kept f32 here so numerics match the f32 PyTorch reference closely; the
# elementwise BN/LeakyReLU path stays f32 regardless (v5e VPU has no bf16).
MXU_DTYPE = jnp.float32


def _leaky(x):
    return jnp.where(x > 0, x, NEG_SLOPE * x)


def _conv3_same(x, w_fused, b):
    """'same' Conv1d(k=3) on one full sequence in (C, L) layout.

    x: (Cin, L); w_fused: (Cout, 3*Cin) with taps stacked tap-major on the
    contraction dim; b: (Cout, 1).  All three taps run as a single MXU matmul.
    """
    c, l = x.shape
    zcol = jnp.zeros((c, 1), x.dtype)
    prev = jnp.concatenate([zcol, x[:, : l - 1]], axis=1)   # x[l-1], zero left pad
    nxt = jnp.concatenate([x[:, 1:], zcol], axis=1)         # x[l+1], zero right pad
    lhs = jnp.concatenate([prev, x, nxt], axis=0)           # (3*Cin, L)
    y = jnp.dot(w_fused.astype(MXU_DTYPE), lhs.astype(MXU_DTYPE),
                preferred_element_type=jnp.float32)
    return y + b


def _sum_sumsq(y):
    # One-pass BN partial statistics for this tile: per-channel sum / sumsq.
    s = jnp.sum(y, axis=-1, keepdims=True)
    q = jnp.sum(y * y, axis=-1, keepdims=True)
    return jnp.concatenate([s, q], axis=-1)                 # (Cout, 2)


def _conv1_kernel(x_ref, w1_ref, b1_ref, y1_ref, stats_ref):
    # Pass 1: conv1 pre-BN output + per-tile BN1 partial statistics.
    y = _conv3_same(x_ref[0], w1_ref[...], b1_ref[...])
    y1_ref[0] = y
    stats_ref[0] = _sum_sumsq(y)


def _conv2_kernel(y1_ref, sc1_ref, sh1_ref, w2_ref, b2_ref, y2_ref, stats_ref):
    # Pass 2: BN1 (precomputed scale/shift) + LeakyReLU, conv2 pre-BN,
    # per-tile BN2 partial statistics.
    h = _leaky(y1_ref[0] * sc1_ref[...] + sh1_ref[...])
    y = _conv3_same(h, w2_ref[...], b2_ref[...])
    y2_ref[0] = y
    stats_ref[0] = _sum_sumsq(y)


def _finalize_kernel(x_ref, y2_ref, sc2_ref, sh2_ref, wp_ref, bp_ref,
                     conv_ref, down_ref):
    # Pass 3: BN2 + LeakyReLU (conv-branch output), 1x1 projection skip,
    # residual LeakyReLU, MaxPool1d(2, 2) along L.
    c = _leaky(y2_ref[0] * sc2_ref[...] + sh2_ref[...])     # (Cout, L)
    conv_ref[0] = c

    skip = jnp.dot(wp_ref[...].astype(MXU_DTYPE), x_ref[0].astype(MXU_DTYPE),
                   preferred_element_type=jnp.float32) + bp_ref[...]
    r = _leaky(skip + c)                                    # (Cout, L)

    # MaxPool1d(2,2): select even/odd columns with exact 0/1 matmuls and take
    # the max (multiplying by exactly 1.0/0.0 -> bit-exact copy, on idle MXU).
    l = r.shape[-1]
    src = lax.broadcasted_iota(jnp.int32, (l, l // 2), 0)
    dst = lax.broadcasted_iota(jnp.int32, (l, l // 2), 1)
    sel_even = jnp.where(src == 2 * dst, 1.0, 0.0).astype(r.dtype)
    sel_odd = jnp.where(src == 2 * dst + 1, 1.0, 0.0).astype(r.dtype)
    down_ref[0] = jnp.maximum(
        jnp.dot(r, sel_even, preferred_element_type=jnp.float32),
        jnp.dot(r, sel_odd, preferred_element_type=jnp.float32))


def _rep_spec(a):
    # Small parameter replicated to every grid step (fetched once: constant
    # block index).
    return pl.BlockSpec(a.shape, lambda n: (0,) * a.ndim)


def _mosaic_params():
    return pltpu.CompilerParams(
        dimension_semantics=("parallel",),   # batch tiles -> both v7x TCs
        vmem_limit_bytes=VMEM_LIMIT_BYTES)


def _bn_affine(stats, gamma, beta, count):
    """Fold global batch stats (sum, sumsq) + BN params into scale/shift."""
    tot = jnp.sum(stats, axis=0)                            # (Cout, 2)
    mean = tot[:, 0] / count
    var = jnp.maximum(tot[:, 1] / count - mean * mean, 0.0)  # clamp E[x^2]-E[x]^2
    scale = gamma * lax.rsqrt(var + BN_EPS)
    shift = beta - mean * scale
    return scale[:, None], shift[:, None]                   # (Cout, 1) each


def residual_down_block(x_ncl, kparams):
    """x_ncl: (N, Cin, L) f32 (PyTorch NCL).  Returns (conv_output, downsampled) in NCL."""
    (w1f, b1, g1, be1, w2f, b2, g2, be2, wp, bp) = kparams
    N, cin, L = x_ncl.shape
    cout = w1f.shape[0]
    assert L % 2 == 0, "MaxPool1d(2,2) assumes an even sequence length"

    x_spec = pl.BlockSpec((1, cin, L), lambda n: (n, 0, 0))
    y_spec = pl.BlockSpec((1, cout, L), lambda n: (n, 0, 0))
    stats_spec = pl.BlockSpec((1, cout, 2), lambda n: (n, 0, 0))
    down_spec = pl.BlockSpec((1, cout, L // 2), lambda n: (n, 0, 0))

    # --- pass 1: conv1 + BN1 partial stats --------------------------------
    y1, stats1 = pl.pallas_call(
        _conv1_kernel,
        out_shape=(jax.ShapeDtypeStruct((N, cout, L), jnp.float32),
                   jax.ShapeDtypeStruct((N, cout, 2), jnp.float32)),
        grid_spec=pltpu.PrefetchScalarGridSpec(
            num_scalar_prefetch=0, grid=(N,),
            in_specs=[x_spec, _rep_spec(w1f), _rep_spec(b1)],
            out_specs=[y_spec, stats_spec]),
        compiler_params=_mosaic_params(),
    )(x_ncl, w1f, b1)
    sc1, sh1 = _bn_affine(stats1, g1, be1, N * L)

    # --- pass 2: BN1 + LeakyReLU, conv2 + BN2 partial stats ----------------
    y2, stats2 = pl.pallas_call(
        _conv2_kernel,
        out_shape=(jax.ShapeDtypeStruct((N, cout, L), jnp.float32),
                   jax.ShapeDtypeStruct((N, cout, 2), jnp.float32)),
        grid_spec=pltpu.PrefetchScalarGridSpec(
            num_scalar_prefetch=0, grid=(N,),
            in_specs=[y_spec, _rep_spec(sc1), _rep_spec(sh1),
                      _rep_spec(w2f), _rep_spec(b2)],
            out_specs=[y_spec, stats_spec]),
        compiler_params=_mosaic_params(),
    )(y1, sc1, sh1, w2f, b2)
    sc2, sh2 = _bn_affine(stats2, g2, be2, N * L)

    # --- pass 3: BN2 + LeakyReLU, 1x1 skip, residual, maxpool --------------
    conv_out, down = pl.pallas_call(
        _finalize_kernel,
        out_shape=(jax.ShapeDtypeStruct((N, cout, L), jnp.float32),
                   jax.ShapeDtypeStruct((N, cout, L // 2), jnp.float32)),
        grid_spec=pltpu.PrefetchScalarGridSpec(
            num_scalar_prefetch=0, grid=(N,),
            in_specs=[x_spec, y_spec, _rep_spec(sc2), _rep_spec(sh2),
                      _rep_spec(wp), _rep_spec(bp)],
            out_specs=[y_spec, down_spec]),
        compiler_params=_mosaic_params(),
    )(x_ncl, y2, sc2, sh2, wp, bp)
    return conv_out, down


def ref_forward(x_ncl, tparams):
    """Pure-JAX reference using PyTorch (NCL / OIH) conventions."""
    (w1, b1, g1, be1, w2, b2, g2, be2, wp, bp) = tparams

    def conv1d(x, w, b):
        pad = (w.shape[-1] - 1) // 2
        y = lax.conv_general_dilated(x, w, window_strides=(1,),
                                     padding=[(pad, pad)],
                                     dimension_numbers=("NCH", "OIH", "NCH"))
        return y + b[None, :, None]

    def bn(x, g, bta):
        mu = jnp.mean(x, axis=(0, 2), keepdims=True)
        var = jnp.mean((x - mu) ** 2, axis=(0, 2), keepdims=True)
        return (x - mu) * lax.rsqrt(var + BN_EPS) * g[None, :, None] + bta[None, :, None]

    h = _leaky(bn(conv1d(x_ncl, w1, b1), g1, be1))
    c = _leaky(bn(conv1d(h, w2, b2), g2, be2))
    skip = conv1d(x_ncl, wp, bp)
    r = _leaky(skip + c)
    N, C, L = r.shape
    down = jnp.max(r.reshape(N, C, L // 2, 2), axis=-1)
    return c, down


if __name__ == "__main__":
    N, cin, L = 2, 4, 16
    cout = 2 * cin

    key = jax.random.PRNGKey(0)
    ks = jax.random.split(key, 11)
    # Deterministic synthetic parameters (PyTorch shape conventions).
    w1_t = 0.3 * jax.random.normal(ks[0], (cout, cin, 3), jnp.float32)
    b1_t = 0.1 * jax.random.normal(ks[1], (cout,), jnp.float32)
    g1 = 1.0 + 0.2 * jax.random.normal(ks[2], (cout,), jnp.float32)
    be1 = 0.1 * jax.random.normal(ks[3], (cout,), jnp.float32)
    w2_t = 0.3 * jax.random.normal(ks[4], (cout, cout, 3), jnp.float32)
    b2_t = 0.1 * jax.random.normal(ks[5], (cout,), jnp.float32)
    g2 = 1.0 + 0.2 * jax.random.normal(ks[6], (cout,), jnp.float32)
    be2 = 0.1 * jax.random.normal(ks[7], (cout,), jnp.float32)
    wp_t = 0.3 * jax.random.normal(ks[8], (cout, cin, 1), jnp.float32)
    bp_t = 0.1 * jax.random.normal(ks[9], (cout,), jnp.float32)
    x = jax.random.normal(ks[10], (N, cin, L), jnp.float32)

    # Kernel-layout parameters: fused (Cout, 3*Cin) conv weights (tap-major on
    # the contraction dim) and (Cout, 1) bias columns; BN gamma/beta stay (Cout,)
    # since they are folded into scale/shift in the wrapper.
    kparams = (
        jnp.transpose(w1_t, (0, 2, 1)).reshape(cout, 3 * cin), b1_t[:, None],
        g1, be1,
        jnp.transpose(w2_t, (0, 2, 1)).reshape(cout, 3 * cout), b2_t[:, None],
        g2, be2,
        wp_t[:, :, 0], bp_t[:, None],
    )

    conv_out, down = jax.jit(residual_down_block)(x, kparams)
    jax.block_until_ready((conv_out, down))

    ref_conv, ref_down = ref_forward(x, (w1_t, b1_t, g1, be1,
                                         w2_t, b2_t, g2, be2, wp_t, bp_t))
    assert conv_out.shape == (N, cout, L) and down.shape == (N, cout, L // 2)
    assert jnp.allclose(conv_out, ref_conv, atol=5e-4, rtol=5e-4)
    assert jnp.allclose(down, ref_down, atol=5e-4, rtol=5e-4)
    print("KERNEL_OK")
</pallas_src>

<mosaic_0001>
module attributes {stable_mosaic.version = 11 : i64} {
  func.func @_conv1_kernel(%arg0: i32, %arg1: memref<1x4x16xf32, #tpu.memory_space<vmem>>, %arg2: memref<8x12xf32, #tpu.memory_space<vmem>>, %arg3: memref<8x1xf32, #tpu.memory_space<vmem>>, %arg4: memref<1x8x16xf32, #tpu.memory_space<vmem>>, %arg5: memref<1x8x2xf32, #tpu.memory_space<vmem>>) attributes {dimension_semantics = [#tpu.dimension_semantics<parallel>], iteration_bounds = array<i64: 2>, scalar_prefetch = 0 : i64, scratch_operands = 0 : i64, tpu.core_type = #tpu.core_type<tc>, window_params = [{transform_indices = @transform_0, window_bounds = array<i64: 1, 4, 16>}, {pipeline_mode = #tpu.pipeline_mode<synchronous>, transform_indices = @transform_1, window_bounds = array<i64: 8, 12>}, {pipeline_mode = #tpu.pipeline_mode<synchronous>, transform_indices = @transform_2, window_bounds = array<i64: 8, 1>}, {transform_indices = @transform_3, window_bounds = array<i64: 1, 8, 16>}, {transform_indices = @transform_4, window_bounds = array<i64: 1, 8, 2>}]} {
    %c0 = arith.constant 0 : index
    %c0_0 = arith.constant 0 : index
    %c0_1 = arith.constant 0 : index
    %0 = vector.load %arg1[%c0, %c0_0, %c0_1] : memref<1x4x16xf32, #tpu.memory_space<vmem>>, vector<1x4x16xf32>
    %1 = vector.shape_cast %0 : vector<1x4x16xf32> to vector<4x16xf32>
    %c0_2 = arith.constant 0 : index
    %c0_3 = arith.constant 0 : index
    %2 = vector.load %arg2[%c0_2, %c0_3] : memref<8x12xf32, #tpu.memory_space<vmem>>, vector<8x12xf32>
    %c0_4 = arith.constant 0 : index
    %c0_5 = arith.constant 0 : index
    %3 = vector.load %arg3[%c0_4, %c0_5] : memref<8x1xf32, #tpu.memory_space<vmem>>, vector<8x1xf32>
    %cst = arith.constant 0.000000e+00 : f32
    %4 = vector.broadcast %cst : f32 to vector<4x1xf32>
    %5 = vector.extract_strided_slice %1 {offsets = [0, 0], sizes = [4, 15], strides = [1, 1]} : vector<4x16xf32> to vector<4x15xf32>
    %6 = tpu.concatenate %4, %5 in 1 : vector<4x1xf32>, vector<4x15xf32> -> vector<4x16xf32>
    %7 = vector.extract_strided_slice %1 {offsets = [0, 1], sizes = [4, 15], strides = [1, 1]} : vector<4x16xf32> to vector<4x15xf32>
    %8 = tpu.concatenate %7, %4 in 1 : vector<4x15xf32>, vector<4x1xf32> -> vector<4x16xf32>
    %9 = tpu.concatenate %6, %1, %8 in 0 : vector<4x16xf32>, vector<4x16xf32>, vector<4x16xf32> -> vector<12x16xf32>
    %cst_6 = arith.constant dense<0.000000e+00> : vector<8x16xf32>
    %10 = tpu.matmul %2, %9, %cst_6 {dimension_numbers = #tpu.dot_dimension_numbers<[1], [0], [0], [1], [0, 0, 1, 1], [], []>} : vector<8x12xf32>, vector<12x16xf32>, vector<8x16xf32> -> vector<8x16xf32>
    %11 = vector.broadcast %3 : vector<8x1xf32> to vector<8x16xf32>
    %12 = arith.addf %10, %11 : vector<8x16xf32>
    %c0_7 = arith.constant 0 : index
    %c0_8 = arith.constant 0 : index
    %c0_9 = arith.constant 0 : index
    %13 = vector.load %arg4[%c0_7, %c0_8, %c0_9] : memref<1x8x16xf32, #tpu.memory_space<vmem>>, vector<1x8x16xf32>
    %14 = vector.shape_cast %13 : vector<1x8x16xf32> to vector<8x16xf32>
    %15 = vector.shape_cast %12 : vector<8x16xf32> to vector<1x8x16xf32>
    tpu.vector_store %arg4[%c0_7, %c0_8, %c0_9], %15 {strides = array<i32>} : memref<1x8x16xf32, #tpu.memory_space<vmem>>, vector<1x8x16xf32>,
    %cst_10 = arith.constant dense<0.000000e+00> : vector<8xf32>
    %16 = vector.multi_reduction <add>, %12, %cst_10 [1] : vector<8x16xf32> to vector<8xf32>
    %17 = vector.shape_cast %16 : vector<8xf32> to vector<8x1xf32>
    %18 = arith.mulf %12, %12 : vector<8x16xf32>
    %cst_11 = arith.constant dense<0.000000e+00> : vector<8xf32>
    %19 = vector.multi_reduction <add>, %18, %cst_11 [1] : vector<8x16xf32> to vector<8xf32>
    %20 = vector.shape_cast %19 : vector<8xf32> to vector<8x1xf32>
    %21 = tpu.concatenate %17, %20 in 1 : vector<8x1xf32>, vector<8x1xf32> -> vector<8x2xf32>
    %c0_12 = arith.constant 0 : index
    %c0_13 = arith.constant 0 : index
    %c0_14 = arith.constant 0 : index
    %22 = vector.load %arg5[%c0_12, %c0_13, %c0_14] : memref<1x8x2xf32, #tpu.memory_space<vmem>>, vector<1x8x2xf32>
    %23 = vector.shape_cast %22 : vector<1x8x2xf32> to vector<8x2xf32>
    %24 = vector.shape_cast %21 : vector<8x2xf32> to vector<1x8x2xf32>
    tpu.vector_store %arg5[%c0_12, %c0_13, %c0_14], %24 {strides = array<i32>} : memref<1x8x2xf32, #tpu.memory_space<vmem>>, vector<1x8x2xf32>,
    return
  }
  func.func @transform_0(%arg0: i32) -> (i32, i32, i32) {
    %c0_i32 = arith.constant 0 : i32
    %c0_i32_0 = arith.constant 0 : i32
    %c0_i32_1 = arith.constant 0 : i32
    return %arg0, %c0_i32, %c0_i32_0 : i32, i32, i32
  }
  func.func @transform_1(%arg0: i32) -> (i32, i32) {
    %c0_i32 = arith.constant 0 : i32
    %c0_i32_0 = arith.constant 0 : i32
    %c0_i32_1 = arith.constant 0 : i32
    return %c0_i32, %c0_i32_0 : i32, i32
  }
  func.func @transform_2(%arg0: i32) -> (i32, i32) {
    %c0_i32 = arith.constant 0 : i32
    %c0_i32_0 = arith.constant 0 : i32
    %c0_i32_1 = arith.constant 0 : i32
    return %c0_i32, %c0_i32_0 : i32, i32
  }
  func.func @transform_3(%arg0: i32) -> (i32, i32, i32) {
    %c0_i32 = arith.constant 0 : i32
    %c0_i32_0 = arith.constant 0 : i32
    %c0_i32_1 = arith.constant 0 : i32
    return %arg0, %c0_i32, %c0_i32_0 : i32, i32, i32
  }
  func.func @transform_4(%arg0: i32) -> (i32, i32, i32) {
    %c0_i32 = arith.constant 0 : i32
    %c0_i32_0 = arith.constant 0 : i32
    %c0_i32_1 = arith.constant 0 : i32
    return %arg0, %c0_i32, %c0_i32_0 : i32, i32, i32
  }
}

module attributes {stable_mosaic.version = 11 : i64} {
  func.func @_conv2_kernel(%arg0: i32, %arg1: memref<1x8x16xf32, #tpu.memory_space<vmem>>, %arg2: memref<8x1xf32, #tpu.memory_space<vmem>>, %arg3: memref<8x1xf32, #tpu.memory_space<vmem>>, %arg4: memref<8x24xf32, #tpu.memory_space<vmem>>, %arg5: memref<8x1xf32, #tpu.memory_space<vmem>>, %arg6: memref<1x8x16xf32, #tpu.memory_space<vmem>>, %arg7: memref<1x8x2xf32, #tpu.memory_space<vmem>>) attributes {dimension_semantics = [#tpu.dimension_semantics<parallel>], iteration_bounds = array<i64: 2>, scalar_prefetch = 0 : i64, scratch_operands = 0 : i64, tpu.core_type = #tpu.core_type<tc>, window_params = [{transform_indices = @transform_0, window_bounds = array<i64: 1, 8, 16>}, {pipeline_mode = #tpu.pipeline_mode<synchronous>, transform_indices = @transform_1, window_bounds = array<i64: 8, 1>}, {pipeline_mode = #tpu.pipeline_mode<synchronous>, transform_indices = @transform_2, window_bounds = array<i64: 8, 1>}, {pipeline_mode = #tpu.pipeline_mode<synchronous>, transform_indices = @transform_3, window_bounds = array<i64: 8, 24>}, {pipeline_mode = #tpu.pipeline_mode<synchronous>, transform_indices = @transform_4, window_bounds = array<i64: 8, 1>}, {transform_indices = @transform_5, window_bounds = array<i64: 1, 8, 16>}, {transform_indices = @transform_6, window_bounds = array<i64: 1, 8, 2>}]} {
    %c0 = arith.constant 0 : index
    %c0_0 = arith.constant 0 : index
    %c0_1 = arith.constant 0 : index
    %0 = vector.load %arg1[%c0, %c0_0, %c0_1] : memref<1x8x16xf32, #tpu.memory_space<vmem>>, vector<1x8x16xf32>
    %1 = vector.shape_cast %0 : vector<1x8x16xf32> to vector<8x16xf32>
    %c0_2 = arith.constant 0 : index
    %c0_3 = arith.constant 0 : index
    %2 = vector.load %arg2[%c0_2, %c0_3] : memref<8x1xf32, #tpu.memory_space<vmem>>, vector<8x1xf32>
    %3 = vector.broadcast %2 : vector<8x1xf32> to vector<8x16xf32>
    %4 = arith.mulf %1, %3 : vector<8x16xf32>
    %c0_4 = arith.constant 0 : index
    %c0_5 = arith.constant 0 : index
    %5 = vector.load %arg3[%c0_4, %c0_5] : memref<8x1xf32, #tpu.memory_space<vmem>>, vector<8x1xf32>
    %6 = vector.broadcast %5 : vector<8x1xf32> to vector<8x16xf32>
    %7 = arith.addf %4, %6 : vector<8x16xf32>
    %cst = arith.constant 0.000000e+00 : f32
    %8 = vector.broadcast %cst : f32 to vector<8x16xf32>
    %9 = arith.cmpf ogt, %7, %8 : vector<8x16xf32>
    %cst_6 = arith.constant 0.00999999977 : f32
    %10 = vector.broadcast %cst_6 : f32 to vector<8x16xf32>
    %11 = arith.mulf %10, %7 : vector<8x16xf32>
    %12 = arith.select %9, %7, %11 : vector<8x16xi1>, vector<8x16xf32>
    %c0_7 = arith.constant 0 : index
    %c0_8 = arith.constant 0 : index
    %13 = vector.load %arg4[%c0_7, %c0_8] : memref<8x24xf32, #tpu.memory_space<vmem>>, vector<8x24xf32>
    %c0_9 = arith.constant 0 : index
    %c0_10 = arith.constant 0 : index
    %14 = vector.load %arg5[%c0_9, %c0_10] : memref<8x1xf32, #tpu.memory_space<vmem>>, vector<8x1xf32>
    %cst_11 = arith.constant 0.000000e+00 : f32
    %15 = vector.broadcast %cst_11 : f32 to vector<8x1xf32>
    %16 = vector.extract_strided_slice %12 {offsets = [0, 0], sizes = [8, 15], strides = [1, 1]} : vector<8x16xf32> to vector<8x15xf32>
    %17 = tpu.concatenate %15, %16 in 1 : vector<8x1xf32>, vector<8x15xf32> -> vector<8x16xf32>
    %18 = vector.extract_strided_slice %12 {offsets = [0, 1], sizes = [8, 15], strides = [1, 1]} : vector<8x16xf32> to vector<8x15xf32>
    %19 = tpu.concatenate %18, %15 in 1 : vector<8x15xf32>, vector<8x1xf32> -> vector<8x16xf32>
    %20 = tpu.concatenate %17, %12, %19 in 0 : vector<8x16xf32>, vector<8x16xf32>, vector<8x16xf32> -> vector<24x16xf32>
    %cst_12 = arith.constant dense<0.000000e+00> : vector<8x16xf32>
    %21 = tpu.matmul %13, %20, %cst_12 {dimension_numbers = #tpu.dot_dimension_numbers<[1], [0], [0], [1], [0, 0, 1, 1], [], []>} : vector<8x24xf32>, vector<24x16xf32>, vector<8x16xf32> -> vector<8x16xf32>
    %22 = vector.broadcast %14 : vector<8x1xf32> to vector<8x16xf32>
    %23 = arith.addf %21, %22 : vector<8x16xf32>
    %c0_13 = arith.constant 0 : index
    %c0_14 = arith.constant 0 : index
    %c0_15 = arith.constant 0 : index
    %24 = vector.load %arg6[%c0_13, %c0_14, %c0_15] : memref<1x8x16xf32, #tpu.memory_space<vmem>>, vector<1x8x16xf32>
    %25 = vector.shape_cast %24 : vector<1x8x16xf32> to vector<8x16xf32>
    %26 = vector.shape_cast %23 : vector<8x16xf32> to vector<1x8x16xf32>
    tpu.vector_store %arg6[%c0_13, %c0_14, %c0_15], %26 {strides = array<i32>} : memref<1x8x16xf32, #tpu.memory_space<vmem>>, vector<1x8x16xf32>,
    %cst_16 = arith.constant dense<0.000000e+00> : vector<8xf32>
    %27 = vector.multi_reduction <add>, %23, %cst_16 [1] : vector<8x16xf32> to vector<8xf32>
    %28 = vector.shape_cast %27 : vector<8xf32> to vector<8x1xf32>
    %29 = arith.mulf %23, %23 : vector<8x16xf32>
    %cst_17 = arith.constant dense<0.000000e+00> : vector<8xf32>
    %30 = vector.multi_reduction <add>, %29, %cst_17 [1] : vector<8x16xf32> to vector<8xf32>
    %31 = vector.shape_cast %30 : vector<8xf32> to vector<8x1xf32>
    %32 = tpu.concatenate %28, %31 in 1 : vector<8x1xf32>, vector<8x1xf32> -> vector<8x2xf32>
    %c0_18 = arith.constant 0 : index
    %c0_19 = arith.constant 0 : index
    %c0_20 = arith.constant 0 : index
    %33 = vector.load %arg7[%c0_18, %c0_19, %c0_20] : memref<1x8x2xf32, #tpu.memory_space<vmem>>, vector<1x8x2xf32>
    %34 = vector.shape_cast %33 : vector<1x8x2xf32> to vector<8x2xf32>
    %35 = vector.shape_cast %32 : vector<8x2xf32> to vector<1x8x2xf32>
    tpu.vector_store %arg7[%c0_18, %c0_19, %c0_20], %35 {strides = array<i32>} : memref<1x8x2xf32, #tpu.memory_space<vmem>>, vector<1x8x2xf32>,
    return
  }
  func.func @transform_0(%arg0: i32) -> (i32, i32, i32) {
    %c0_i32 = arith.constant 0 : i32
    %c0_i32_0 = arith.constant 0 : i32
    %c0_i32_1 = arith.constant 0 : i32
    return %arg0, %c0_i32, %c0_i32_0 : i32, i32, i32
  }
  func.func @transform_1(%arg0: i32) -> (i32, i32) {
    %c0_i32 = arith.constant 0 : i32
    %c0_i32_0 = arith.constant 0 : i32
    %c0_i32_1 = arith.constant 0 : i32
    return %c0_i32, %c0_i32_0 : i32, i32
  }
  func.func @transform_2(%arg0: i32) -> (i32, i32) {
    %c0_i32 = arith.constant 0 : i32
    %c0_i32_0 = arith.constant 0 : i32
    %c0_i32_1 = arith.constant 0 : i32
    return %c0_i32, %c0_i32_0 : i32, i32
  }
  func.func @transform_3(%arg0: i32) -> (i32, i32) {
    %c0_i32 = arith.constant 0 : i32
    %c0_i32_0 = arith.constant 0 : i32
    %c0_i32_1 = arith.constant 0 : i32
    return %c0_i32, %c0_i32_0 : i32, i32
  }
  func.func @transform_4(%arg0: i32) -> (i32, i32) {
    %c0_i32 = arith.constant 0 : i32
    %c0_i32_0 = arith.constant 0 : i32
    %c0_i32_1 = arith.constant 0 : i32
    return %c0_i32, %c0_i32_0 : i32, i32
  }
  func.func @transform_5(%arg0: i32) -> (i32, i32, i32) {
    %c0_i32 = arith.constant 0 : i32
    %c0_i32_0 = arith.constant 0 : i32
    %c0_i32_1 = arith.constant 0 : i32
    return %arg0, %c0_i32, %c0_i32_0 : i32, i32, i32
  }
  func.func @transform_6(%arg0: i32) -> (i32, i32, i32) {
    %c0_i32 = arith.constant 0 : i32
    %c0_i32_0 = arith.constant 0 : i32
    %c0_i32_1 = arith.constant 0 : i32
    return %arg0, %c0_i32, %c0_i32_0 : i32, i32, i32
  }
}

module attributes {stable_mosaic.version = 11 : i64} {
  func.func @_finalize_kernel(%arg0: i32, %arg1: memref<1x4x16xf32, #tpu.memory_space<vmem>>, %arg2: memref<1x8x16xf32, #tpu.memory_space<vmem>>, %arg3: memref<8x1xf32, #tpu.memory_space<vmem>>, %arg4: memref<8x1xf32, #tpu.memory_space<vmem>>, %arg5: memref<8x4xf32, #tpu.memory_space<vmem>>, %arg6: memref<8x1xf32, #tpu.memory_space<vmem>>, %arg7: memref<1x8x16xf32, #tpu.memory_space<vmem>>, %arg8: memref<1x8x8xf32, #tpu.memory_space<vmem>>) attributes {dimension_semantics = [#tpu.dimension_semantics<parallel>], iteration_bounds = array<i64: 2>, scalar_prefetch = 0 : i64, scratch_operands = 0 : i64, tpu.core_type = #tpu.core_type<tc>, window_params = [{transform_indices = @transform_0, window_bounds = array<i64: 1, 4, 16>}, {transform_indices = @transform_1, window_bounds = array<i64: 1, 8, 16>}, {pipeline_mode = #tpu.pipeline_mode<synchronous>, transform_indices = @transform_2, window_bounds = array<i64: 8, 1>}, {pipeline_mode = #tpu.pipeline_mode<synchronous>, transform_indices = @transform_3, window_bounds = array<i64: 8, 1>}, {pipeline_mode = #tpu.pipeline_mode<synchronous>, transform_indices = @transform_4, window_bounds = array<i64: 8, 4>}, {pipeline_mode = #tpu.pipeline_mode<synchronous>, transform_indices = @transform_5, window_bounds = array<i64: 8, 1>}, {transform_indices = @transform_6, window_bounds = array<i64: 1, 8, 16>}, {transform_indices = @transform_7, window_bounds = array<i64: 1, 8, 8>}]} {
    %c0 = arith.constant 0 : index
    %c0_0 = arith.constant 0 : index
    %c0_1 = arith.constant 0 : index
    %0 = vector.load %arg2[%c0, %c0_0, %c0_1] : memref<1x8x16xf32, #tpu.memory_space<vmem>>, vector<1x8x16xf32>
    %1 = vector.shape_cast %0 : vector<1x8x16xf32> to vector<8x16xf32>
    %c0_2 = arith.constant 0 : index
    %c0_3 = arith.constant 0 : index
    %2 = vector.load %arg3[%c0_2, %c0_3] : memref<8x1xf32, #tpu.memory_space<vmem>>, vector<8x1xf32>
    %3 = vector.broadcast %2 : vector<8x1xf32> to vector<8x16xf32>
    %4 = arith.mulf %1, %3 : vector<8x16xf32>
    %c0_4 = arith.constant 0 : index
    %c0_5 = arith.constant 0 : index
    %5 = vector.load %arg4[%c0_4, %c0_5] : memref<8x1xf32, #tpu.memory_space<vmem>>, vector<8x1xf32>
    %6 = vector.broadcast %5 : vector<8x1xf32> to vector<8x16xf32>
    %7 = arith.addf %4, %6 : vector<8x16xf32>
    %cst = arith.constant 0.000000e+00 : f32
    %8 = vector.broadcast %cst : f32 to vector<8x16xf32>
    %9 = arith.cmpf ogt, %7, %8 : vector<8x16xf32>
    %cst_6 = arith.constant 0.00999999977 : f32
    %10 = vector.broadcast %cst_6 : f32 to vector<8x16xf32>
    %11 = arith.mulf %10, %7 : vector<8x16xf32>
    %12 = arith.select %9, %7, %11 : vector<8x16xi1>, vector<8x16xf32>
    %c0_7 = arith.constant 0 : index
    %c0_8 = arith.constant 0 : index
    %c0_9 = arith.constant 0 : index
    %13 = vector.load %arg7[%c0_7, %c0_8, %c0_9] : memref<1x8x16xf32, #tpu.memory_space<vmem>>, vector<1x8x16xf32>
    %14 = vector.shape_cast %13 : vector<1x8x16xf32> to vector<8x16xf32>
    %15 = vector.shape_cast %12 : vector<8x16xf32> to vector<1x8x16xf32>
    tpu.vector_store %arg7[%c0_7, %c0_8, %c0_9], %15 {strides = array<i32>} : memref<1x8x16xf32, #tpu.memory_space<vmem>>, vector<1x8x16xf32>,
    %c0_10 = arith.constant 0 : index
    %c0_11 = arith.constant 0 : index
    %16 = vector.load %arg5[%c0_10, %c0_11] : memref<8x4xf32, #tpu.memory_space<vmem>>, vector<8x4xf32>
    %c0_12 = arith.constant 0 : index
    %c0_13 = arith.constant 0 : index
    %c0_14 = arith.constant 0 : index
    %17 = vector.load %arg1[%c0_12, %c0_13, %c0_14] : memref<1x4x16xf32, #tpu.memory_space<vmem>>, vector<1x4x16xf32>
    %18 = vector.shape_cast %17 : vector<1x4x16xf32> to vector<4x16xf32>
    %cst_15 = arith.constant dense<0.000000e+00> : vector<8x16xf32>
    %19 = tpu.matmul %16, %18, %cst_15 {dimension_numbers = #tpu.dot_dimension_numbers<[1], [0], [0], [1], [0, 0, 1, 1], [], []>} : vector<8x4xf32>, vector<4x16xf32>, vector<8x16xf32> -> vector<8x16xf32>
    %c0_16 = arith.constant 0 : index
    %c0_17 = arith.constant 0 : index
    %20 = vector.load %arg6[%c0_16, %c0_17] : memref<8x1xf32, #tpu.memory_space<vmem>>, vector<8x1xf32>
    %21 = vector.broadcast %20 : vector<8x1xf32> to vector<8x16xf32>
    %22 = arith.addf %19, %21 : vector<8x16xf32>
    %23 = arith.addf %22, %12 : vector<8x16xf32>
    %cst_18 = arith.constant 0.000000e+00 : f32
    %24 = vector.broadcast %cst_18 : f32 to vector<8x16xf32>
    %25 = arith.cmpf ogt, %23, %24 : vector<8x16xf32>
    %cst_19 = arith.constant 0.00999999977 : f32
    %26 = vector.broadcast %cst_19 : f32 to vector<8x16xf32>
    %27 = arith.mulf %26, %23 : vector<8x16xf32>
    %28 = arith.select %25, %23, %27 : vector<8x16xi1>, vector<8x16xf32>
    %29 = tpu.iota {dimensions = array<i32: 0>} : vector<16x8xi32>
    %30 = tpu.iota {dimensions = array<i32: 1>} : vector<16x8xi32>
    %c2_i32 = arith.constant 2 : i32
    %31 = vector.broadcast %c2_i32 : i32 to vector<16x8xi32>
    %32 = arith.muli %31, %30 : vector<16x8xi32>
    %33 = arith.cmpi eq, %29, %32 : vector<16x8xi32>
    %cst_20 = arith.constant 1.000000e+00 : f32
    %cst_21 = arith.constant 0.000000e+00 : f32
    %34 = vector.broadcast %cst_20 : f32 to vector<16x8xf32>
    %35 = vector.broadcast %cst_21 : f32 to vector<16x8xf32>
    %36 = arith.select %33, %34, %35 : vector<16x8xi1>, vector<16x8xf32>
    %c2_i32_22 = arith.constant 2 : i32
    %37 = vector.broadcast %c2_i32_22 : i32 to vector<16x8xi32>
    %38 = arith.muli %37, %30 : vector<16x8xi32>
    %c1_i32 = arith.constant 1 : i32
    %39 = vector.broadcast %c1_i32 : i32 to vector<16x8xi32>
    %40 = arith.addi %38, %39 : vector<16x8xi32>
    %41 = arith.cmpi eq, %29, %40 : vector<16x8xi32>
    %cst_23 = arith.constant 1.000000e+00 : f32
    %cst_24 = arith.constant 0.000000e+00 : f32
    %42 = vector.broadcast %cst_23 : f32 to vector<16x8xf32>
    %43 = vector.broadcast %cst_24 : f32 to vector<16x8xf32>
    %44 = arith.select %41, %42, %43 : vector<16x8xi1>, vector<16x8xf32>
    %cst_25 = arith.constant dense<0.000000e+00> : vector<8x8xf32>
    %45 = tpu.matmul %28, %36, %cst_25 {dimension_numbers = #tpu.dot_dimension_numbers<[1], [0], [0], [1], [0, 0, 1, 1], [], []>} : vector<8x16xf32>, vector<16x8xf32>, vector<8x8xf32> -> vector<8x8xf32>
    %cst_26 = arith.constant dense<0.000000e+00> : vector<8x8xf32>
    %46 = tpu.matmul %28, %44, %cst_26 {dimension_numbers = #tpu.dot_dimension_numbers<[1], [0], [0], [1], [0, 0, 1, 1], [], []>} : vector<8x16xf32>, vector<16x8xf32>, vector<8x8xf32> -> vector<8x8xf32>
    %47 = arith.maximumf %45, %46 : vector<8x8xf32>
    %c0_27 = arith.constant 0 : index
    %c0_28 = arith.constant 0 : index
    %c0_29 = arith.constant 0 : index
    %48 = vector.load %arg8[%c0_27, %c0_28, %c0_29] : memref<1x8x8xf32, #tpu.memory_space<vmem>>, vector<1x8x8xf32>
    %49 = vector.shape_cast %48 : vector<1x8x8xf32> to vector<8x8xf32>
    %50 = vector.shape_cast %47 : vector<8x8xf32> to vector<1x8x8xf32>
    tpu.vector_store %arg8[%c0_27, %c0_28, %c0_29], %50 {strides = array<i32>} : memref<1x8x8xf32, #tpu.memory_space<vmem>>, vector<1x8x8xf32>,
    return
  }
  func.func @transform_0(%arg0: i32) -> (i32, i32, i32) {
    %c0_i32 = arith.constant 0 : i32
    %c0_i32_0 = arith.constant 0 : i32
    %c0_i32_1 = arith.constant 0 : i32
    return %arg0, %c0_i32, %c0_i32_0 : i32, i32, i32
  }
  func.func @transform_1(%arg0: i32) -> (i32, i32, i32) {
    %c0_i32 = arith.constant 0 : i32
    %c0_i32_0 = arith.constant 0 : i32
    %c0_i32_1 = arith.constant 0 : i32
    return %arg0, %c0_i32, %c0_i32_0 : i32, i32, i32
  }
  func.func @transform_2(%arg0: i32) -> (i32, i32) {
    %c0_i32 = arith.constant 0 : i32
    %c0_i32_0 = arith.constant 0 : i32
    %c0_i32_1 = arith.constant 0 : i32
    return %c0_i32, %c0_i32_0 : i32, i32
  }
  func.func @transform_3(%arg0: i32) -> (i32, i32) {
    %c0_i32 = arith.constant 0 : i32
    %c0_i32_0 = arith.constant 0 : i32
    %c0_i32_1 = arith.constant 0 : i32
    return %c0_i32, %c0_i32_0 : i32, i32
  }
  func.func @transform_4(%arg0: i32) -> (i32, i32) {
    %c0_i32 = arith.constant 0 : i32
    %c0_i32_0 = arith.constant 0 : i32
    %c0_i32_1 = arith.constant 0 : i32
    return %c0_i32, %c0_i32_0 : i32, i32
  }
  func.func @transform_5(%arg0: i32) -> (i32, i32) {
    %c0_i32 = arith.constant 0 : i32
    %c0_i32_0 = arith.constant 0 : i32
    %c0_i32_1 = arith.constant 0 : i32
    return %c0_i32, %c0_i32_0 : i32, i32
  }
  func.func @transform_6(%arg0: i32) -> (i32, i32, i32) {
    %c0_i32 = arith.constant 0 : i32
    %c0_i32_0 = arith.constant 0 : i32
    %c0_i32_1 = arith.constant 0 : i32
    return %arg0, %c0_i32, %c0_i32_0 : i32, i32, i32
  }
  func.func @transform_7(%arg0: i32) -> (i32, i32, i32) {
    %c0_i32 = arith.constant 0 : i32
    %c0_i32_0 = arith.constant 0 : i32
    %c0_i32_1 = arith.constant 0 : i32
    return %arg0, %c0_i32, %c0_i32_0 : i32, i32, i32
  }
}

</mosaic_0001>

<bundles_post_ra>
// kernel: residual_down_block.3
= control target key start
LH: loop header
LB: loop body
LE: loop exit
PB: predicated region body
PF: predicated region fallthrough
CT: control target
= control target key end

     0   :  { %s483_s15 = smov 0   ;;  %s515_s0 = inlined_call_operand.vmem [shape: f32[2,4,16], index: 0, kind: input, shape index: {}]   ;;  %s516_s1 = inlined_call_operand.vmem [shape: f32[8,12], index: 1, kind: input, shape index: {}]   ;;  %s517_s2 = inlined_call_operand.vmem [shape: f32[8,1], index: 2, kind: input, shape index: {}]   ;;  %s518_s3 = inlined_call_operand.vmem [shape: f32[2,8,16], index: 3, kind: output, shape index: {0}]   ;;  %s519_s4 = inlined_call_operand.vmem [shape: f32[2,8,2], index: 4, kind: output, shape index: {1}]  }
   0x1 LB: > { %s400_s16 = sadd.s32 4294967295, %s449_s15   ;;  %p404_p0 = scmp.ge.s32.totalorder %s449_s15, 1  ;;  %s449_s15 = sphi %s483_s15, %s15_s15  }
   0x2   : > { %p164_p1 = scmp.lt.s32.totalorder %s449_s15, 3 }
   0x4   : > { %p165_p2 = pnand %p404_p0, %p164_p1 }
   0x5   : > { %p192_p3 = scmp.lt.s32.totalorder (!%p165_p2), %s400_s16, 1  ;;  %v451_v0 = vmov (!%p165_p2), 0.0|0.0   ;;  %vm452_vm0 = vmmov (!%p165_p2), 0   ;;  %v453_v1 = vmov (!%p165_p2), 0.0   ;;  %v206_v2 = vld [vmem:[%s517_s2] sm:$0xff] (!%p165_p2)  ;;  %v454_v3 = vmov (!%p165_p2), 0  }
   0x6   : > { %168 = sbr.rel (%p165_p2) target bundleno = 503 (0x1f7), region = 32  ;;  %422 = vmatprep.subr.bf16.mxu0 (!%p165_p2), %v451_v0  ;;  %419 = vmatprep.mubr.msk.f32.mxu0 (!%p165_p2), %vm452_vm0, %v453_v1  ;;  %s455_s23 = smov (!%p165_p2), 1   ;;  %vm211_vm1 = vcmask (!%p165_p2), 7168   ;;  %vm216_vm2 = vcmask (!%p165_p2), 121856   ;;  %vm220_vm3 = vcmask (!%p165_p2), 1043456   ;;  %vm457_vm4 = vmmov (!%p165_p2), 1  }
   0x7   : > { %441 = vset.pattern.permute.xlu1 (!%p165_p2), %v454_v3  ;;  %442 = vset.pattern.permute.xlu0 (!%p165_p2), %v454_v3  ;;  %s456_s24 = smov (!%p165_p2), 127   ;;  %vm424_vm5 = vmpackc.low (!%p165_p2), %vm220_vm3, %vm457_vm4  ;;  %v205_v12 = vld [vmem:[%s516_s1] sm:$0xff] (!%p165_p2)  ;;  %vm227_vm6 = vcmask (!%p165_p2), 97280   ;;  %vm304_vm7 = vcmask (!%p165_p2), 130048   ;;  %vm314_vm8 = vcmask (!%p165_p2), 15360  }
   0x8   : > { %224 = vperm.xlu1 (!%p165_p2), %441, %v206_v2  }
   0xd   : > { %s521_s16 = smov (!%p192_p3, %s400_s16), 1 }
   0xe   : > { %s405_s17 = sshll.u32 %s521_s16, 2  ;;  %s406_s27 = sshll.u32 %s521_s16, 3 }
   0xf   : > { %s195_s22 = scalar_lea.vmem %s515_s0, %s405_s17  ;;  %s199_s30 = scalar_lea.vmem %s518_s3, %s406_s27 }
  0x10   : > { %v204_v4 = vld [vmem:[%s195_s22] sm:$0xf]  ;;  %s203_s7 = scalar_lea.vmem %s519_s4, %s406_s27 }
  0x11   : > { %208 = vrot.lane.b32.xlu0 %v204_v4, %s455_s23  ;;  %v218_v6 = vrot.slane %v204_v4, 4 }
  0x15   : > { %213 = vrot.lane.b32.xlu0 %v204_v4, %s456_s24 }
  0x83   : > { %v209_v5 = vpop.permute.xlu0 %208 }
  0x84   : > { %v212_v7 = vsel %vm211_vm1, 0.0, %v209_v5 }
  0x85   : > { %v221_v10 = vsel %vm220_vm3, %v212_v7, %v218_v6 }
  0x87   : > { %v214_v8 = vpop.permute.xlu0 %213  ;;  %v225_v13 = vpop.permute.xlu1 %224 }
  0x88   : > { %v217_v9 = vsel %vm216_vm2, %v214_v8, 0.0 }
  0x89   : > { %v423_v11 = vpack.c.bf16 %v217_v9, %v221_v10 }
  0x8b   : > { %425 = vmatpush3.bf16.msk.msra.mxu0 %vm424_vm5, %v423_v11 }
  0x8e   : > { %420 = vmatmul.mubr.msk.f32.vlgmr.msra.gmra.mrb[0].mxu0 %vm227_vm6, %v205_v12 }
 0x161   : > { %v300_v14 = vpop.f32.mrb[0].mxu0 }
 0x162   : > { %v301_v15 = vadd.f32 %v300_v14, %v225_v13  ;;  %v421_v16 = vpop.f32.mrb[1].mxu0 }
 0x164   : > { %v306_v17 = vsel %vm304_vm7, %v301_v15, 0.0  ;;  %305 = vst.msk [vmem:[%s199_s30] sm:$0xff] %vm304_vm7, %v301_v15  ;;  %v309_v18 = vmul.f32 %v301_v15, %v301_v15 }
 0x165   : > { %307 = vadd.xlane.f32.xlu1 %v306_v17 }
 0x166   : > { %v310_v19 = vsel %vm304_vm7, %v309_v18, 0.0 }
 0x167   : > { %311 = vadd.xlane.f32.xlu0 %v310_v19 }
 0x1f2   : > { %v308_v20 = vpop.xlane.xlu1 %307 }
 0x1f4   : > { %v312_v21 = vpop.xlane.xlu0 %311 }
 0x1f5   : > { %v313_v22 = vsel %vm211_vm1, %v308_v20, %v312_v21 }
 0x1f6   : > { %315 = vst.msk [vmem:[%s203_s7] sm:$0xff] %vm314_vm8, %v313_v22 }
 0x1f7 PF: > { %s15_s15 = sadd.s32 1, %s449_s15  }
 0x1f8   : > { %p12_p4 = scmp.ge.s32.totalorder %s15_s15, 4  }
 0x1fa   :  { %14 = sbr.rel (!%p12_p4) target bundleno = 1 (0x1), region = 74 }

// kernel: residual_down_block.4
= control target key start
LH: loop header
LB: loop body
LE: loop exit
PB: predicated region body
PF: predicated region fallthrough
CT: control target
= control target key end

     0   :  { %s561_s21 = smov 0   ;;  %s600_s0 = inlined_call_operand.vmem [shape: f32[2,8,16], index: 0, kind: input, shape index: {}]   ;;  %s601_s1 = inlined_call_operand.vmem [shape: f32[8,1], index: 1, kind: input, shape index: {}]   ;;  %s602_s2 = inlined_call_operand.vmem [shape: f32[8,1], index: 2, kind: input, shape index: {}]   ;;  %s603_s3 = inlined_call_operand.vmem [shape: f32[8,24], index: 3, kind: input, shape index: {}]   ;;  %s604_s4 = inlined_call_operand.vmem [shape: f32[8,1], index: 4, kind: input, shape index: {}]   ;;  %s605_s5 = inlined_call_operand.vmem [shape: f32[2,8,16], index: 5, kind: output, shape index: {0}]   ;;  %s606_s6 = inlined_call_operand.vmem [shape: f32[2,8,2], index: 6, kind: output, shape index: {1}]  }
   0x1 LB: > { %s464_s22 = sadd.s32 4294967295, %s517_s21   ;;  %p468_p0 = scmp.ge.s32.totalorder %s517_s21, 1  ;;  %s517_s21 = sphi %s561_s21, %s17_s21  }
   0x2   : > { %p214_p1 = scmp.lt.s32.totalorder %s517_s21, 3 }
   0x4   : > { %p215_p2 = pnand %p468_p0, %p214_p1 }
   0x5   : > { %v259_v0 = vld [vmem:[%s601_s1] sm:$0xff] (!%p215_p2)  ;;  %v519_v1 = vmov (!%p215_p2), 0   ;;  %p246_p3 = scmp.lt.s32.totalorder (!%p215_p2), %s464_s22, 1  ;;  %v520_v4 = vmov (!%p215_p2), 0.0|0.0   ;;  %vm521_vm0 = vmmov (!%p215_p2), 0   ;;  %v522_v8 = vmov (!%p215_p2), 0.0  }
   0x6   : > { %218 = sbr.rel (%p215_p2) target bundleno = 627 (0x273), region = 40  ;;  %510 = vset.pattern.permute.xlu0 (!%p215_p2), %v519_v1  ;;  %v266_v2 = vld [vmem:[%s602_s2] sm:$0xff] (!%p215_p2)  ;;  %491 = vmatprep.subr.bf16.mxu0 (!%p215_p2), %v520_v4  ;;  %s523_s9 = smov (!%p215_p2), 1   ;;  %vm282_vm2 = vcmask (!%p215_p2), 7168   ;;  %vm525_vm4 = vmmov (!%p215_p2), 1   ;;  %vm287_vm6 = vcmask (!%p215_p2), 121856  }
   0x7   : > { %262 = vperm.xlu0 (!%p215_p2), %510, %v259_v0   ;;  %v277_v3 = vld [vmem:[%s604_s4] sm:$0xff] (!%p215_p2)  ;;  %488 = vmatprep.mubr.msk.f32.mxu0 (!%p215_p2), %vm521_vm0, %v522_v8  ;;  %s524_s10 = smov (!%p215_p2), 127   ;;  %vm472_vm3 = vmneg (!%p215_p2), %vm282_vm2  ;;  %vm294_vm7 = vcmask (!%p215_p2), 195584   ;;  %vm368_vm8 = vcmask (!%p215_p2), 130048   ;;  %vm378_vm9 = vcmask (!%p215_p2), 15360  }
   0x8   : > { %vm493_vm5 = vmpackc.low (!%p215_p2), %vm525_vm4, %vm472_vm3  ;;  %v276_v15 = vld [vmem:[%s603_s3] sm:$0xff] (!%p215_p2) }
   0xb   : > { %269 = vperm.xlu0 (!%p215_p2), %510, %v266_v2  }
   0xd   : > { %s608_s22 = smov (!%p246_p3, %s464_s22), 1 }
   0xe   : > { %s578_s29 = sshll.u32 %s608_s22, 3 }
   0xf   : > { %291 = vperm.xlu0 %510, %v277_v3   ;;  %s249_s8 = scalar_lea.vmem %s600_s0, %s578_s29  ;;  %s253_s15 = scalar_lea.vmem %s605_s5, %s578_s29 }
  0x10   : > { %v258_v6 = vld [vmem:[%s249_s8] sm:$0xff]  ;;  %s257_s18 = scalar_lea.vmem %s606_s6, %s578_s29 }
  0x86   : > { %v263_v5 = vpop.permute.xlu0 %262 }
  0x87   : > { %v265_v7 = vmul.f32 %v263_v5, %v258_v6 }
  0x8a   : > { %v270_v9 = vpop.permute.xlu0 %269 }
  0x8b   : > { %v272_v10 = vadd.f32 %v270_v9, %v265_v7 }
  0x8d   : > { %v274_v11 = vmul.f32 0.01, %v272_v10  ;;  %vm273_vm1 = vcmp.gt.f32.partialorder %v272_v10, 0.0 }
  0x8e   : > { %v292_v17 = vpop.permute.xlu0 %291 }
  0x8f   : > { %v275_v12 = vsel %vm273_vm1, %v272_v10, %v274_v11 }
  0x90   : > { %279 = vrot.lane.b32.xlu1 %v275_v12, %s523_s9 }
  0x94   : > { %284 = vrot.lane.b32.xlu1 %v275_v12, %s524_s10 }
 0x102   : > { %v280_v13 = vpop.permute.xlu1 %279 }
 0x103   : > { %v492_v14 = vpack.c.bf16 %v275_v12, %v280_v13 }
 0x105   : > { %494 = vmatpush3.bf16.msk.msra.mxu0 %vm493_vm5, %v492_v14 }
 0x106   : > { %486 = vmatprep.subr.mxu0 %v522_v8  ;;  %v285_v16 = vpop.permute.xlu1 %284 }
 0x109   : > { %487 = vmatpush3.msk.msra.mxu0 %vm287_vm6, %v285_v16 }
 0x10a   : > { %489 = vmatmul.mubr.msk.f32.vlgmr.msra.gmra.mrb[0].mxu0 %vm294_vm7, %v276_v15 }
 0x1dd   : > { %v364_v18 = vpop.f32.mrb[0].mxu0 }
 0x1de   : > { %v365_v19 = vadd.f32 %v364_v18, %v292_v17  ;;  %v490_v20 = vpop.f32.mrb[1].mxu0 }
 0x1e0   : > { %v370_v21 = vsel %vm368_vm8, %v365_v19, 0.0  ;;  %369 = vst.msk [vmem:[%s253_s15] sm:$0xff] %vm368_vm8, %v365_v19  ;;  %v373_v22 = vmul.f32 %v365_v19, %v365_v19 }
 0x1e1   : > { %371 = vadd.xlane.f32.xlu1 %v370_v21 }
 0x1e2   : > { %v374_v23 = vsel %vm368_vm8, %v373_v22, 0.0 }
 0x1e3   : > { %375 = vadd.xlane.f32.xlu0 %v374_v23 }
 0x26e   : > { %v372_v24 = vpop.xlane.xlu1 %371 }
 0x270   : > { %v376_v25 = vpop.xlane.xlu0 %375 }
 0x271   : > { %v377_v26 = vsel %vm282_vm2, %v372_v24, %v376_v25 }
 0x272   : > { %379 = vst.msk [vmem:[%s257_s18] sm:$0xff] %vm378_vm9, %v377_v26 }
 0x273 PF: > { %s17_s21 = sadd.s32 1, %s517_s21  }
 0x274   : > { %p14_p4 = scmp.ge.s32.totalorder %s17_s21, 4  }
 0x276   :  { %16 = sbr.rel (!%p14_p4) target bundleno = 1 (0x1), region = 82 }

// kernel: residual_down_block.5
= control target key start
LH: loop header
LB: loop body
LE: loop exit
PB: predicated region body
PF: predicated region fallthrough
CT: control target
= control target key end

     0   :  { %13 = vsyncpa [#allocation3], 0  ;;  %s1114_s0 = inlined_call_operand.vmem [shape: f32[2,4,16], index: 0, kind: input, shape index: {}]   ;;  %s1115_s1 = inlined_call_operand.vmem [shape: f32[2,8,16], index: 1, kind: input, shape index: {}]   ;;  %s1116_s2 = inlined_call_operand.vmem [shape: f32[8,1], index: 2, kind: input, shape index: {}]   ;;  %s1117_s3 = inlined_call_operand.vmem [shape: f32[8,1], index: 3, kind: input, shape index: {}]   ;;  %s1118_s4 = inlined_call_operand.vmem [shape: f32[8,4], index: 4, kind: input, shape index: {}]   ;;  %s1119_s5 = inlined_call_operand.vmem [shape: f32[8,1], index: 5, kind: input, shape index: {}]   ;;  %s1120_s6 = inlined_call_operand.hbm [shape: f32[2,8,16], index: 6, kind: output, shape index: {0}]   ;;  %s1121_s7 = inlined_call_operand.hbm [shape: f32[2,8,8], index: 7, kind: output, shape index: {1}]  }
   0x1   :  { %15 = vsyncpa [#allocation3 + $0x1], 0 }
   0x2   :  { %16 = vsyncpa [#allocation5], 0 }
   0x3   :  { %18 = vsyncpa [#allocation5 + $0x1], 0  ;;  %s957_s24 = smov 0   ;;  %s959_s25 = smov 0  }
   0x4   :  { %s961_s26 = smov 0   ;;  %s963_s27 = smov 0  }
   0x5 LB: > { %s978_s28 = sadd.s32 4294967295, %s908_s27   ;;  %s708_s29 = sadd.s32 4294967294, %s908_s27   ;;  %s908_s27 = sphi %s963_s27, %s1127_s27   ;;  %s904_s26 = sphi %s961_s26, %s1126_s26   ;;  %s900_s25 = sphi %s959_s25, %s1125_s25   ;;  %s896_s24 = sphi %s957_s24, %s1124_s24  }
   0x6   : > { %s982_s30 = sadd.s32 1, %s908_s27   ;;  %s167_s8 = sadd.s32 1, %s904_s26 }
   0x7   : > { %s164_s9 = ssub.s32 %s908_s27, %s982_s30  ;;  %p177_p0 = scmp.ne.s32.totalorder %s904_s26, %s900_s25 }
   0x8   : > { %p165_p1 = scmp.eq.s32.totalorder %s164_s9, 0  ;;  %p178_p2 = scmp.eq.s32.totalorder %s978_s28, 1 }
   0x9   : > { %p183_p3 = scmp.ne.s32.totalorder %s900_s25, %s896_s24  ;;  %p184_p4 = scmp.eq.s32.totalorder %s708_s29, 1 }
   0xa   : > { %s993_s10 = scalar_select %p165_p1, %s904_s26, %s167_s8  }
   0xb   : > { %p995_p5 = por %p178_p2, %p177_p0  ;;  %p999_p6 = por %p184_p4, %p183_p3 }
   0xc   : > { %p711_p7 = scmp.ge.s32.totalorder %s908_s27, 1  ;;  %p254_p8 = scmp.lt.s32.totalorder %s908_s27, 3 }
   0xe   : > { %p255_p9 = pnand %p711_p7, %p254_p8 }
   0xf   : > { %p294_p10 = scmp.lt.s32.totalorder (!%p255_p9), %s978_s28, 1  ;;  %v910_v0 = vmov (!%p255_p9), 0.0   ;;  %vm911_vm0 = vmmov (!%p255_p9), 0   ;;  %v303_v1 = vld [vmem:[%s1116_s2] sm:$0xff] (!%p255_p9)  ;;  %v912_v3 = vmov (!%p255_p9), 0   ;;  %vm334_vm1 = vcmask (!%p255_p9), 1043456  }
  0x10   : > { %258 = sbr.rel (%p255_p9) target bundleno = 476 (0x1dc), region = 44  ;;  %738 = vmatprep.subr.mxu0 (!%p255_p9), %v910_v0  ;;  %740 = vmatprep.mubr.msk.f32.mxu0 (!%p255_p9), %vm911_vm0, %v910_v0  ;;  %v324_v2 = vld [vmem:[%s1119_s5] sm:$0xff] (!%p255_p9)  ;;  %vm330_vm2 = vcmask (!%p255_p9), 31744   ;;  %v412_v7 = vlaneseq (!%p255_p9)  ;;  %v913_v13 = vmov (!%p255_p9), 0.0|0.0   ;;  %v914_v14 = vmov (!%p255_p9), 1.0|1.0  }
  0x11   : > { %812 = vset.pattern.permute.xlu0 (!%p255_p9), %v912_v3  ;;  %813 = vset.pattern.permute.xlu1 (!%p255_p9), %v912_v3  ;;  %v310_v4 = vld [vmem:[%s1117_s3] sm:$0xff] (!%p255_p9)  ;;  %s1033_s16 = sand.u32 (!%p255_p9), 1, %s900_s25   ;;  %vm320_vm10 = vcmask (!%p255_p9), 130048   ;;  %s726_s19 = sshll.u32 (!%p255_p9), %s978_s28, 7 }
  0x12   : > { %306 = vperm.xlu0 (!%p255_p9), %812, %v303_v1   ;;  %327 = vperm.xlu1 (!%p255_p9), %813, %v324_v2   ;;  %v322_v5 = vld [vmem:[%s1118_s4] sm:$0xff] (!%p255_p9)  ;;  %v416_v8 = vand.u32 (!%p255_p9), 127, %v412_v7  ;;  %v413_v9 = vshrl.u32 (!%p255_p9), %v412_v7, 7  ;;  %s1044_s22 = scalar_lea.hbm (!%p255_p9), %s1120_s6, %s726_s19  ;;  %s574_s29 = scalar_lea.sflag (!%p255_p9), [#allocation3], %s1033_s16 }
  0x13   : > { %747 = vmatprep.mubr.msk.f32.mxu1 (!%p255_p9), %vm911_vm0, %v910_v0  ;;  %757 = vmatprep.subr.bf16.mxu1 (!%p255_p9), %v913_v13 }
  0x14   : > { %v417_v10 = vmul.u32 (!%p255_p9), 2, %v416_v8  ;;  %v414_v11 = vadd.s32 (!%p255_p9), 8, %v413_v9 }
  0x16   : > { %313 = vperm.xlu0 (!%p255_p9), %812, %v310_v4   ;;  %v422_v12 = vadd.s32 (!%p255_p9), 1, %v417_v10  ;;  %vm418_vm5 = vcmp.eq.s32.totalorder (!%p255_p9), %v413_v9, %v417_v10  ;;  %vm419_vm7 = vcmp.eq.s32.totalorder (!%p255_p9), %v414_v11, %v417_v10 }
  0x17   : > { %s1014_s17 = scalar_select %p294_p10, %s978_s28, 1  ;;  %vm758_vm8 = vmpackc.low %vm419_vm7, %vm418_vm5 }
  0x18   : > { %vm423_vm3 = vcmp.eq.s32.totalorder %v413_v9, %v422_v12  ;;  %vm424_vm4 = vcmp.eq.s32.totalorder %v414_v11, %v422_v12  ;;  %759 = vmatpush3.bf16.msk.msra.mxu1 %vm758_vm8, %v914_v14 }
  0x19   : > { %s714_s18 = sshll.u32 %s1014_s17, 2  ;;  %vm761_vm6 = vmpackc.low %vm424_vm4, %vm423_vm3  ;;  %s715_s9 = sshll.u32 %s1014_s17, 3 }
  0x1a   : > { %s297_s23 = scalar_lea.vmem %s1114_s0, %s714_s18  ;;  %s301_s15 = scalar_lea.vmem %s1115_s1, %s715_s9 }
  0x1b   : > { %v323_v6 = vld [vmem:[%s297_s23] sm:$0xf]  ;;  %s712_s18 = sshll.u32 %s1033_s16, 3  ;;  %s915_s9 = smov [#allocation2]  }
  0x1c   : > { %739 = vmatpush3.msk.msra.mxu0 %vm334_vm1, %v323_v6  ;;  %v302_v15 = vld [vmem:[%s301_s15] sm:$0xff]  ;;  %s286_s17 = scalar_lea.vmem [#allocation2], %s712_s18  ;;  %s818_s13 = sshll.u32 %s915_s9, 4  ;;  %s819_s13 = int_to_ptr.vmem [resolvable:$false] %s818_s13 }
  0x1d   : > { %741 = vmatmul.mubr.msk.f32.vlgmr.msra.gmra.mrb[0].mxu0 %vm330_vm2, %v322_v5  ;;  %760 = vmatprep.subr.bf16.mxu0 %v913_v13  ;;  %s592_s23 = sshll.u32 %s286_s17, 4  ;;  %s820_s14 = scalar_lea.vmem %s819_s13, 256  ;;  %s593_s23 = int_to_ptr.vmem [resolvable:$true] %s592_s23 }
  0x1e   : > { %754 = vmatprep.mubr.msk.f32.mxu0 %vm911_vm0, %v910_v0  ;;  %762 = vmatpush3.bf16.msk.msra.mxu0 %vm761_vm6, %v914_v14  ;;  %s814_s8 = scalar_lea.vmem %s593_s23, 128  ;;  %p821_p0 = scmp.lt.s32.totalorder %s593_s23, %s819_s13 }
  0x1f   : > { %p815_p11 = scmp.ne.s32.totalorder %s593_s23, %s814_s8  ;;  %p822_p1 = scmp.lt.s32.totalorder %s820_s14, %s814_s8 }
  0x21   : > { %p816_p12 = pnand %p815_p11, %p995_p5  ;;  %p823_p2 = por %p822_p1, %p821_p0 }
  0x23   : > { %p817_p13 = pneg %p816_p12 }
  0x25   : > { %p824_p3 = pnand %p823_p2, %p817_p13 }
  0x91   : > { %v307_v16 = vpop.permute.xlu0 %306  ;;  %v328_v22 = vpop.permute.xlu1 %327 }
  0x92   : > { %v309_v17 = vmul.f32 %v307_v16, %v302_v15 }
  0x95   : > { %v314_v18 = vpop.permute.xlu0 %313 }
  0x96   : > { %v316_v19 = vadd.f32 %v314_v18, %v309_v17 }
  0x98   : > { %vm317_vm9 = vcmp.gt.f32.partialorder %v316_v19, 0.0  ;;  %v318_v20 = vmul.f32 0.01, %v316_v19 }
  0x9a   : > { %v319_v21 = vsel %vm317_vm9, %v316_v19, %v318_v20 }
  0x9b   : > { %321 = vst.msk [vmem:[%s286_s17] sm:$0xff] %vm320_vm10, %v319_v21 }
  0xf0   : > { %v404_v23 = vpop.f32.mrb[0].mxu0 }
  0xf1   : > { %v405_v24 = vadd.f32 %v404_v23, %v328_v22  ;;  %v742_v25 = vpop.f32.mrb[1].mxu0 }
  0xf3   : > { %v408_v26 = vadd.f32 %v405_v24, %v319_v21 }
  0xf5   : > { %v410_v27 = vmul.f32 0.01, %v408_v26  ;;  %vm409_vm11 = vcmp.gt.f32.partialorder %v408_v26, 0.0 }
  0xf7   : > { %v411_v28 = vsel %vm409_vm11, %v408_v26, %v410_v27 }
  0xf8   : > { %748 = vmatmul.mubr.msk.f32.vlgmr.msra.gmra.mrb[0].mxu1 %vm320_vm10, %v411_v28  ;;  %755 = vmatmul.mubr.msk.f32.vlgmr.msra.gmra.mrb[2].mxu0 %vm320_vm10, %v411_v28 }
  0xf9   : > { %827 = shalt.err (!%p824_p3)
}
  0xfa   : > { %s828_s15 = scalar_lea.hbm %s1044_s22, 128  ;;  %s832_s21 = scalar_lea.hbm %s1120_s6, 256 }
  0xfb   : > { %p829_p4 = scmp.ne.s32.totalorder %s1044_s22, %s828_s15  ;;  %p833_p9 = scmp.lt.u32.totalorder %s1044_s22, %s1120_s6 }
  0xfc   : > { %p834_p10 = scmp.lt.u32.totalorder %s832_s21, %s828_s15  ;;  %p836_p12 = scmp.lt.u32.totalorder %s828_s15, %s1044_s22 }
  0xfd   : > { %p830_p7 = pnand %p829_p4, %p995_p5 }
  0xfe   : > { %p835_p11 = por %p834_p10, %p833_p9 }
  0xff   : > { %p831_p8 = pneg %p830_p7 }
 0x100   : > { %p837_p13 = por %p836_p12, %p835_p11 }
 0x102   : > { %p838_p0 = pnand %p837_p13, %p831_p8 }
 0x104   : > { %841 = shalt.err (!%p838_p0)
}
 0x105   : > { %763 = dma.vmem_to_hbm [thread:$0]  (%p995_p5), %s593_s23, 128, %s1044_s22, %s574_s29   ;;  %vm571_vm12 = vcmask 64512  }
 0x106   : > { %s293_s8 = scalar_lea.vmem [#allocation4], %s712_s18  ;;  %s1071_s20 = scalar_lea.hbm %s1121_s7, %s726_s19 }
 0x107   : > { %s605_s14 = sshll.u32 %s293_s8, 4  ;;  %s579_s18 = scalar_lea.sflag [#allocation5], %s1033_s16  ;;  %s1073_s14 = int_to_ptr.vmem [resolvable:$true] %s605_s14 }
 0x108   : > { %s842_s22 = scalar_lea.vmem %s1073_s14, 128  ;;  %s916_s23 = smov [#allocation4]  }
 0x109   : > { %p843_p1 = scmp.ne.s32.totalorder %s1073_s14, %s842_s22  ;;  %s846_s29 = sshll.u32 %s916_s23, 4  ;;  %s847_s29 = int_to_ptr.vmem [resolvable:$false] %s846_s29 }
 0x10a   : > { %s848_s28 = scalar_lea.vmem %s847_s29, 256  ;;  %p849_p4 = scmp.lt.s32.totalorder %s1073_s14, %s847_s29 }
 0x10b   : > { %p844_p2 = pnand %p843_p1, %p995_p5  ;;  %p850_p7 = scmp.lt.s32.totalorder %s848_s28, %s842_s22 }
 0x10d   : > { %p845_p3 = pneg %p844_p2  ;;  %p851_p8 = por %p850_p7, %p849_p4 }
 0x10f   : > { %p852_p9 = pnand %p851_p8, %p845_p3 }
 0x1cb   : > { %v496_v29 = vpop.f32.mrb[0].mxu1  ;;  %v566_v30 = vpop.f32.mrb[2].mxu0 }
 0x1cc   : > { %v570_v31 = vmax.f32 %v496_v29, %v566_v30  ;;  %v749_v32 = vpop.f32.mrb[1].mxu1  ;;  %v756_v33 = vpop.f32.mrb[3].mxu0 }
 0x1ce   : > { %572 = vst.msk [vmem:[%s293_s8] sm:$0xff] %vm571_vm12, %v570_v31 }
 0x1cf   : > { %855 = shalt.err (!%p852_p9)
}
 0x1d0   : > { %s856_s16 = scalar_lea.hbm %s1071_s20, 128  ;;  %s860_s9 = scalar_lea.hbm %s1121_s7, 256 }
 0x1d1   : > { %p857_p10 = scmp.ne.s32.totalorder %s1071_s20, %s856_s16  ;;  %p861_p13 = scmp.lt.u32.totalorder %s1071_s20, %s1121_s7 }
 0x1d2   : > { %p862_p0 = scmp.lt.u32.totalorder %s860_s9, %s856_s16  ;;  %p864_p2 = scmp.lt.u32.totalorder %s856_s16, %s1071_s20 }
 0x1d3   : > { %p858_p11 = pnand %p857_p10, %p995_p5 }
 0x1d4   : > { %p863_p1 = por %p862_p0, %p861_p13 }
 0x1d5   : > { %p859_p12 = pneg %p858_p11 }
 0x1d6   : > { %p865_p3 = por %p864_p2, %p863_p1 }
 0x1d8   : > { %p866_p4 = pnand %p865_p3, %p859_p12 }
 0x1da   : > { %869 = shalt.err (!%p866_p4)
}
 0x1db   : > { %764 = dma.vmem_to_hbm [thread:$0]  (%p995_p5), %s1073_s14, 128, %s1071_s20, %s579_s18  }
 0x1dc PF: > { %p774_p7 = scmp.ge.s32.totalorder %s908_s27, 2  ;;  %s617_s15 = sand.u32 1, %s896_s24  }
 0x1dd   : > { %s618_s17 = scalar_lea.sflag [#allocation3], %s617_s15 }
 0x1de   : > { %p768_p8 = pnand %p774_p7, %p999_p6 }
 0x1e0   : > { %887 = dma.done.wait (!%p768_p8), %s618_s17, 128  }
 0x1e1   : > { %889 = vsyncadd (!%p768_p8), %s618_s17, 4294967168  ;;  %s627_s22 = scalar_lea.sflag [#allocation5], %s617_s15 }
 0x1e2   : > { %891 = dma.done.wait (!%p768_p8), %s627_s22, 128  }
 0x1e3   : > { %893 = vsyncadd (!%p768_p8), %s627_s22, 4294967168  ;;  %p21_p5 = scmp.ge.s32.totalorder %s982_s30, 4   ;;  %s1124_s24 = smov %s900_s25 }
 0x1e4   : > { %s1125_s25 = smov %s904_s26  ;;  %s1126_s26 = smov %s993_s10 }
 0x1e5   : > { %s1127_s27 = smov %s982_s30  ;;  %23 = sbr.rel (!%p21_p5) target bundleno = 5 (0x5), region = 99 }
 0x1ec   :  { %632 = vsyncpa [#allocation3], 1 }
 0x1ed   :  { %634 = vsyncpa [#allocation3 + $0x1], 1 }
 0x1ee   :  { %635 = vsyncpa [#allocation5], 1 }
 0x1ef   :  { %637 = vsyncpa [#allocation5 + $0x1], 1 }

</bundles_post_ra>
